<compile_context>
chip_gen: v7x
topology: tpu7x:2x2x1
jax: 0.10.0
libtpu: 0.0.40
codegen_flags: <defaults>
</compile_context>

<pallas_src>
from functools import partial

import jax
import jax.numpy as jnp
import numpy as np
from jax.experimental import pallas as pl
from jax.experimental.pallas import tpu as pltpu

_LANE = 128

# Fixed per-class weights from the PyTorch module (34 classes).
_INSTANCE_INV_SUMS = (
    515257920, 80242488, 22716522, 27322400, 0, 0, 262198, 510640960, 48721176,
    2616676, 896892, 227768096, 6251469, 9440081, 146116, 655928, 338741,
    6654748, 0, 1184962, 4447795, 148047248, 6715583, 40057328, 9196087,
    845308, 73100160, 2680537, 2653371, 148543, 70536, 2323841, 667847, 2654887,
)


def _round_up(x, m):
    return (x + m - 1) // m * m


def _iou_counts_kernel(preds_ref, labels_ref, out_ref, *, ignore_index):
    """Accumulates per-class [tp, pred_count, label_count] over HW tiles."""
    t = pl.program_id(1)

    @pl.when(t == 0)
    def _():
        out_ref[...] = jnp.zeros_like(out_ref)

    x = preds_ref[0]        # (C, T) native dtype
    lab = labels_ref[0]     # (1, T) int32
    C, T = x.shape

    valid = lab != ignore_index                                  # (1, T)
    cls_ids = jax.lax.broadcasted_iota(jnp.int32, (C, T), 0)     # (C, T)

    # Vectorized argmax over the class (sublane) axis; ties resolve to the smallest
    # class index (matches torch.argmax / jnp.argmax).
    maxv = jnp.max(x, axis=0, keepdims=True)                     # (1, T)
    best_idx = jnp.min(jnp.where(x == maxv, cls_ids, jnp.int32(C)),
                       axis=0, keepdims=True)                    # (1, T)

    pred_oh = (cls_ids == best_idx) & valid                      # (C, T)
    lab_oh = (cls_ids == lab) & valid                            # (C, T)

    tp = jnp.sum((pred_oh & lab_oh).astype(jnp.int32), axis=1, keepdims=True)  # (C, 1)
    pc = jnp.sum(pred_oh.astype(jnp.int32), axis=1, keepdims=True)             # (C, 1)
    lc = jnp.sum(lab_oh.astype(jnp.int32), axis=1, keepdims=True)              # (C, 1)

    out_ref[0, :, 0:1] += tp
    out_ref[0, :, 1:2] += pc
    out_ref[0, :, 2:3] += lc


def _pick_hw_tile(C, pred_itemsize, hw):
    """HW (lane) tile: double-buffered inputs + (C, T)-sized temporaries <= ~16 MiB."""
    per_lane = 2 * (C * pred_itemsize + 4) + 32 * C
    budget = 16 * 1024 * 1024
    t = max(_LANE, (budget // per_lane) // _LANE * _LANE)
    t = min(t, 32 * 1024)                       # keep v7x (64 MiB VMEM/TC) comfortable
    return int(min(t, _round_up(hw, _LANE)))


def _weighted_iou(tp, fp, fn):
    """Tiny (B, C) epilogue matching InstanceIoUScore.forward."""
    inv_sums = jnp.asarray(_INSTANCE_INV_SUMS, jnp.float32)
    ratio = inv_sums / jnp.sum(inv_sums)
    weights = 1.0 / jnp.maximum(ratio, 1e-6)    # (34,); requires C == 34 as in torch
    itp = weights * tp
    ifn = weights * fn
    union = itp + fp + ifn
    iou = jnp.where(union == 0, 0.0, itp / jnp.where(union == 0, 1.0, union))
    return (100.0 * jnp.mean(iou)).astype(jnp.float32)


def instance_iou_score(preds, labels, ignore_index=-1):
    """Equivalent of InstanceIoUScore.forward.

    preds: (B, C, H, W) float (streamed in native dtype), labels: (B, H, W) int.
    """
    B, C, H, W = preds.shape
    HW = H * W

    preds_f = preds.reshape(B, C, HW)                     # keep native dtype
    labels_f = labels.reshape(B, 1, HW).astype(jnp.int32)

    T = _pick_hw_tile(C, preds_f.dtype.itemsize, HW)
    HW_pad = _round_up(HW, T)
    if HW_pad != HW:
        pad = HW_pad - HW
        preds_f = jnp.pad(preds_f, ((0, 0), (0, 0), (0, pad)))
        # Padded lanes are labelled ignore_index -> excluded by the validity mask.
        labels_f = jnp.pad(labels_f, ((0, 0), (0, 0), (0, pad)),
                           constant_values=ignore_index)
    n_t = HW_pad // T

    kernel = partial(_iou_counts_kernel, ignore_index=ignore_index)

    counts = pl.pallas_call(
        kernel,
        out_shape=jax.ShapeDtypeStruct((B, C, 8), jnp.int32),
        grid_spec=pltpu.PrefetchScalarGridSpec(
            num_scalar_prefetch=0,
            grid=(B, n_t),
            in_specs=[
                pl.BlockSpec((1, C, T), lambda b, t: (b, 0, t)),   # preds
                pl.BlockSpec((1, 1, T), lambda b, t: (b, 0, t)),   # labels
            ],
            out_specs=pl.BlockSpec((1, C, 8), lambda b, t: (b, 0, 0)),
        ),
        compiler_params=pltpu.CompilerParams(
            dimension_semantics=("parallel", "arbitrary"),
            vmem_limit_bytes=32 * 1024 * 1024,
        ),
        cost_estimate=pl.CostEstimate(
            flops=8 * B * C * HW_pad,
            transcendentals=0,
            bytes_accessed=(B * C * HW_pad * preds_f.dtype.itemsize
                            + B * HW_pad * 4 + B * C * 8 * 4),
        ),
    )(preds_f, labels_f)

    tp = counts[:, :, 0].astype(jnp.float32)
    fp = (counts[:, :, 1] - counts[:, :, 0]).astype(jnp.float32)
    fn = (counts[:, :, 2] - counts[:, :, 0]).astype(jnp.float32)
    return _weighted_iou(tp, fp, fn)


def _reference(preds, labels, ignore_index=-1):
    """Pure-JAX mirror of the PyTorch forward, for correctness checking."""
    B, C, H, W = preds.shape
    pred_cls = jnp.argmax(preds, axis=1)                           # (B, H, W)
    cls = jnp.arange(C, dtype=jnp.int32)[None, :, None, None]      # (1, C, 1, 1)
    mask = (labels != ignore_index)[:, None]                       # (B, 1, H, W)
    pred_oh = (pred_cls[:, None] == cls) & mask
    lab_oh = (labels[:, None] == cls) & mask
    tp = jnp.sum(pred_oh & lab_oh, axis=(2, 3)).astype(jnp.float32)
    fp = jnp.sum(pred_oh & ~lab_oh, axis=(2, 3)).astype(jnp.float32)
    fn = jnp.sum(~pred_oh & lab_oh, axis=(2, 3)).astype(jnp.float32)
    return _weighted_iou(tp, fp, fn)


if __name__ == "__main__":
    key = jax.random.PRNGKey(0)
    k1, k2 = jax.random.split(key)
    # C is fixed at 34 by the module's instance_inv_sums weights.
    B, C, H, W = 2, 34, 16, 16
    preds = jax.random.normal(k1, (B, C, H, W), dtype=jnp.float32)
    labels = jax.random.randint(k2, (B, H, W), 0, C, dtype=jnp.int32)
    labels = labels.at[:, 0, 0].set(-1)   # exercise ignore_index masking

    score = instance_iou_score(preds, labels, ignore_index=-1)
    jax.block_until_ready(score)

    ref = _reference(preds, labels, ignore_index=-1)
    if not np.allclose(np.asarray(score), np.asarray(ref), rtol=1e-5, atol=1e-5):
        raise AssertionError(f"mismatch: kernel={score} ref={ref}")
    print("KERNEL_OK")
</pallas_src>

<mosaic_0001>
module attributes {stable_mosaic.version = 11 : i64} {
  func.func @_iou_counts_kernel(%arg0: i32, %arg1: i32, %arg2: memref<1x34x256xf32, #tpu.memory_space<vmem>>, %arg3: memref<1x1x256xi32, #tpu.memory_space<vmem>>, %arg4: memref<1x34x8xi32, #tpu.memory_space<vmem>>) attributes {dimension_semantics = [#tpu.dimension_semantics<parallel>, #tpu.dimension_semantics<arbitrary>], iteration_bounds = array<i64: 2, 1>, scalar_prefetch = 0 : i64, scratch_operands = 0 : i64, tpu.core_type = #tpu.core_type<tc>, window_params = [{transform_indices = @transform_0, window_bounds = array<i64: 1, 34, 256>}, {transform_indices = @transform_1, window_bounds = array<i64: 1, 1, 256>}, {transform_indices = @transform_2, window_bounds = array<i64: 1, 34, 8>}]} {
    %c0_i32 = arith.constant 0 : i32
    %0 = arith.cmpi eq, %arg1, %c0_i32 : i32
    %1 = arith.extui %0 : i1 to i32
    %c0_i32_0 = arith.constant 0 : i32
    %2 = arith.cmpi ne, %1, %c0_i32_0 : i32
    scf.if %2 {
      %c0_i32_26 = arith.constant 0 : i32
      %54 = vector.broadcast %c0_i32_26 : i32 to vector<1x34x8xi32>
      %c0_27 = arith.constant 0 : index
      %c0_28 = arith.constant 0 : index
      %c0_29 = arith.constant 0 : index
      %55 = vector.load %arg4[%c0_27, %c0_28, %c0_29] : memref<1x34x8xi32, #tpu.memory_space<vmem>>, vector<1x34x8xi32>
      tpu.vector_store %arg4[%c0_27, %c0_28, %c0_29], %54 {strides = array<i32>} : memref<1x34x8xi32, #tpu.memory_space<vmem>>, vector<1x34x8xi32>,
    } else {
    }
    %c0 = arith.constant 0 : index
    %c0_1 = arith.constant 0 : index
    %c0_2 = arith.constant 0 : index
    %3 = vector.load %arg2[%c0, %c0_1, %c0_2] : memref<1x34x256xf32, #tpu.memory_space<vmem>>, vector<1x34x256xf32>
    %4 = vector.shape_cast %3 : vector<1x34x256xf32> to vector<34x256xf32>
    %c0_3 = arith.constant 0 : index
    %c0_4 = arith.constant 0 : index
    %c0_5 = arith.constant 0 : index
    %5 = vector.load %arg3[%c0_3, %c0_4, %c0_5] : memref<1x1x256xi32, #tpu.memory_space<vmem>>, vector<1x1x256xi32>
    %6 = vector.shape_cast %5 : vector<1x1x256xi32> to vector<1x256xi32>
    %c-1_i32 = arith.constant -1 : i32
    %7 = vector.broadcast %c-1_i32 : i32 to vector<1x256xi32>
    %8 = arith.cmpi ne, %6, %7 : vector<1x256xi32>
    %9 = tpu.iota {dimensions = array<i32: 0>} : vector<34x256xi32>
    %cst = arith.constant dense<0xFF800000> : vector<256xf32>
    %10 = vector.multi_reduction <maximumf>, %4, %cst [0] : vector<34x256xf32> to vector<256xf32>
    %11 = vector.shape_cast %10 : vector<256xf32> to vector<1x256xf32>
    %12 = vector.broadcast %11 : vector<1x256xf32> to vector<34x256xf32>
    %13 = arith.cmpf oeq, %4, %12 : vector<34x256xf32>
    %c34_i32 = arith.constant 34 : i32
    %14 = vector.broadcast %c34_i32 : i32 to vector<34x256xi32>
    %15 = arith.select %13, %9, %14 : vector<34x256xi1>, vector<34x256xi32>
    %cst_6 = arith.constant dense<2147483647> : vector<256xi32>
    %16 = vector.multi_reduction <minsi>, %15, %cst_6 [0] : vector<34x256xi32> to vector<256xi32>
    %17 = vector.shape_cast %16 : vector<256xi32> to vector<1x256xi32>
    %18 = vector.broadcast %17 : vector<1x256xi32> to vector<34x256xi32>
    %19 = arith.cmpi eq, %9, %18 : vector<34x256xi32>
    %20 = vector.broadcast %8 : vector<1x256xi1> to vector<34x256xi1>
    %21 = arith.andi %19, %20 : vector<34x256xi1>
    %22 = vector.broadcast %6 : vector<1x256xi32> to vector<34x256xi32>
    %23 = arith.cmpi eq, %9, %22 : vector<34x256xi32>
    %24 = vector.broadcast %8 : vector<1x256xi1> to vector<34x256xi1>
    %25 = arith.andi %23, %24 : vector<34x256xi1>
    %26 = arith.andi %21, %25 : vector<34x256xi1>
    %27 = arith.extui %26 : vector<34x256xi1> to vector<34x256xi32>
    %cst_7 = arith.constant dense<0> : vector<34xi32>
    %28 = vector.multi_reduction <add>, %27, %cst_7 [1] : vector<34x256xi32> to vector<34xi32>
    %29 = vector.shape_cast %28 : vector<34xi32> to vector<34x1xi32>
    %30 = arith.extui %21 : vector<34x256xi1> to vector<34x256xi32>
    %cst_8 = arith.constant dense<0> : vector<34xi32>
    %31 = vector.multi_reduction <add>, %30, %cst_8 [1] : vector<34x256xi32> to vector<34xi32>
    %32 = vector.shape_cast %31 : vector<34xi32> to vector<34x1xi32>
    %33 = arith.extui %25 : vector<34x256xi1> to vector<34x256xi32>
    %cst_9 = arith.constant dense<0> : vector<34xi32>
    %34 = vector.multi_reduction <add>, %33, %cst_9 [1] : vector<34x256xi32> to vector<34xi32>
    %35 = vector.shape_cast %34 : vector<34xi32> to vector<34x1xi32>
    %c0_10 = arith.constant 0 : index
    %c0_11 = arith.constant 0 : index
    %c0_12 = arith.constant 0 : index
    %36 = vector.load %arg4[%c0_10, %c0_11, %c0_12] : memref<1x34x8xi32, #tpu.memory_space<vmem>>, vector<1x34x1xi32>
    %37 = vector.shape_cast %36 : vector<1x34x1xi32> to vector<34x1xi32>
    %38 = arith.addi %37, %29 : vector<34x1xi32>
    %c0_13 = arith.constant 0 : index
    %c0_14 = arith.constant 0 : index
    %c0_15 = arith.constant 0 : index
    %39 = vector.load %arg4[%c0_13, %c0_14, %c0_15] : memref<1x34x8xi32, #tpu.memory_space<vmem>>, vector<1x34x1xi32>
    %40 = vector.shape_cast %39 : vector<1x34x1xi32> to vector<34x1xi32>
    %41 = vector.shape_cast %38 : vector<34x1xi32> to vector<1x34x1xi32>
    tpu.vector_store %arg4[%c0_13, %c0_14, %c0_15], %41 {strides = array<i32>} : memref<1x34x8xi32, #tpu.memory_space<vmem>>, vector<1x34x1xi32>,
    %c0_16 = arith.constant 0 : index
    %c0_17 = arith.constant 0 : index
    %c1 = arith.constant 1 : index
    %42 = vector.load %arg4[%c0_16, %c0_17, %c1] : memref<1x34x8xi32, #tpu.memory_space<vmem>>, vector<1x34x1xi32>
    %43 = vector.shape_cast %42 : vector<1x34x1xi32> to vector<34x1xi32>
    %44 = arith.addi %43, %32 : vector<34x1xi32>
    %c0_18 = arith.constant 0 : index
    %c0_19 = arith.constant 0 : index
    %c1_20 = arith.constant 1 : index
    %45 = vector.load %arg4[%c0_18, %c0_19, %c1_20] : memref<1x34x8xi32, #tpu.memory_space<vmem>>, vector<1x34x1xi32>
    %46 = vector.shape_cast %45 : vector<1x34x1xi32> to vector<34x1xi32>
    %47 = vector.shape_cast %44 : vector<34x1xi32> to vector<1x34x1xi32>
    tpu.vector_store %arg4[%c0_18, %c0_19, %c1_20], %47 {strides = array<i32>} : memref<1x34x8xi32, #tpu.memory_space<vmem>>, vector<1x34x1xi32>,
    %c0_21 = arith.constant 0 : index
    %c0_22 = arith.constant 0 : index
    %c2 = arith.constant 2 : index
    %48 = vector.load %arg4[%c0_21, %c0_22, %c2] : memref<1x34x8xi32, #tpu.memory_space<vmem>>, vector<1x34x1xi32>
    %49 = vector.shape_cast %48 : vector<1x34x1xi32> to vector<34x1xi32>
    %50 = arith.addi %49, %35 : vector<34x1xi32>
    %c0_23 = arith.constant 0 : index
    %c0_24 = arith.constant 0 : index
    %c2_25 = arith.constant 2 : index
    %51 = vector.load %arg4[%c0_23, %c0_24, %c2_25] : memref<1x34x8xi32, #tpu.memory_space<vmem>>, vector<1x34x1xi32>
    %52 = vector.shape_cast %51 : vector<1x34x1xi32> to vector<34x1xi32>
    %53 = vector.shape_cast %50 : vector<34x1xi32> to vector<1x34x1xi32>
    tpu.vector_store %arg4[%c0_23, %c0_24, %c2_25], %53 {strides = array<i32>} : memref<1x34x8xi32, #tpu.memory_space<vmem>>, vector<1x34x1xi32>,
    return
  }
  func.func @transform_0(%arg0: i32, %arg1: i32) -> (i32, i32, i32) {
    %c0_i32 = arith.constant 0 : i32
    %c0_i32_0 = arith.constant 0 : i32
    return %arg0, %c0_i32, %arg1 : i32, i32, i32
  }
  func.func @transform_1(%arg0: i32, %arg1: i32) -> (i32, i32, i32) {
    %c0_i32 = arith.constant 0 : i32
    %c0_i32_0 = arith.constant 0 : i32
    return %arg0, %c0_i32, %arg1 : i32, i32, i32
  }
  func.func @transform_2(%arg0: i32, %arg1: i32) -> (i32, i32, i32) {
    %c0_i32 = arith.constant 0 : i32
    %c0_i32_0 = arith.constant 0 : i32
    %c0_i32_1 = arith.constant 0 : i32
    return %arg0, %c0_i32, %c0_i32_0 : i32, i32, i32
  }
}

</mosaic_0001>

<bundles_post_ra>
// kernel: tpu_custom_call.1
= control target key start
LH: loop header
LB: loop body
LE: loop exit
PB: predicated region body
PF: predicated region fallthrough
CT: control target
= control target key end

     0   :  { %s825_s9 = smov 0   ;;  %s827_s10 = smov 0   ;;  %s1256_s0 = inlined_call_operand.vmem [shape: f32[2,34,256], index: 0, kind: input, shape index: {}]   ;;  %s1257_s1 = inlined_call_operand.vmem [shape: s32[2,1,256], index: 1, kind: input, shape index: {}]   ;;  %s1258_s2 = inlined_call_operand.vmem [shape: s32[2,34,8], index: 2, kind: output, shape index: {}]  }
   0x1   :  { %s829_s11 = smov 0  }
   0x2 LB: > { %s24_s12 = sadd.s32 1, %s803_s10  ;;  %p752_p0 = scmp.ge.s32.totalorder %s807_s11, 1  ;;  %s807_s11 = sphi %s829_s11, %s12_s11   ;;  %s803_s10 = sphi %s827_s10, %s1332_s10   ;;  %s799_s9 = sphi %s825_s9, %s1331_s9  }
   0x3   : > { %p26_p1 = scmp.ge.s32.totalorder %s24_s12, 2  ;;  %p147_p2 = scmp.lt.s32.totalorder %s807_s11, 3 }
   0x5   : > { %s1334_s12 = smov (%p26_p1, %s24_s12), 0  ;;  %p148_p3 = pnand %p752_p0, %p147_p2 }
   0x6   : > { %p182_p4 = scmp.lt.s32.totalorder (!%p148_p3), %s799_s9, 1  ;;  %vm1259_vm0 = vcmask (!%p148_p3), 1041408   ;;  %v228_v23 = vlaneseq (!%p148_p3)  ;;  %v809_v62 = vmov (!%p148_p3), 0  }
   0x7   : > { %151 = sbr.rel (%p148_p3) target bundleno = 282 (0x11a), region = 28 }
   0x8   : > { %v851_v28 = vshrl.u32 (!%p148_p3), %v228_v23, 7 }
   0xa   : > { %v854_v32 = vadd.s32 (!%p148_p3), 8, %v851_v28  ;;  %v857_v34 = vadd.s32 (!%p148_p3), 16, %v851_v28  ;;  %v860_v35 = vadd.s32 (!%p148_p3), 24, %v851_v28  ;;  %v863_v36 = vadd.s32 (!%p148_p3), 32, %v851_v28 }
   0xb   : > { %v326_v60 = vsub.s32 (!%p148_p3), 0, %v851_v28 }
   0xe   : > { %s1336_s9 = smov (!%p182_p4, %s799_s9), 1 }
   0xf   : > { %s758_s13 = smul.u32 80, %s1336_s9  ;;  %s754_s17 = sshll.u32 %s1336_s9, 1 }
  0x10   : > { %s198_s20 = scalar_lea.vmem %s1257_s1, %s754_s17  ;;  %s759_s21 = smul.u32 40, %s1336_s9 }
  0x11   : > { %s189_s16 = scalar_lea.vmem %s1256_s0, %s758_s13  ;;  %v226_v49 = vld [vmem:[%s198_s20] sm:$0x3] }
  0x12   : > { %v216_v0 = vld [vmem:[%s189_s16] sm:$0xff]  ;;  %v217_v1 = vld [vmem:[%s189_s16 + $0x8] sm:$0xff]  ;;  %v218_v2 = vld [vmem:[%s189_s16 + $0x10] sm:$0xff]  ;;  %s1163_s24 = scalar_lea.vmem %s1258_s2, %s759_s21 }
  0x13   : > { %v219_v3 = vld [vmem:[%s189_s16 + $0x18] sm:$0xff]  ;;  %v220_v4 = vld [vmem:[%s189_s16 + $0x20] sm:$0xff]  ;;  %v221_v5 = vld [vmem:[%s189_s16 + $0x28] sm:$0xff] }
  0x14   : > { %v222_v6 = vld [vmem:[%s189_s16 + $0x30] sm:$0xff]  ;;  %v223_v7 = vld [vmem:[%s189_s16 + $0x38] sm:$0xff]  ;;  %v224_v8 = vld [vmem:[%s189_s16 + $0x40] sm:$0x3]  ;;  %v234_v9 = vmax.f32 %v216_v0, %v220_v4  ;;  %v246_v10 = vmax.f32 %v217_v1, %v221_v5 }
  0x15   : > { %v225_v11 = vld [vmem:[%s189_s16 + $0x48] sm:$0x3]  ;;  %v235_v12 = vmax.f32 %v218_v2, %v222_v6  ;;  %v237_v13 = vsel %vm1259_vm0, %v224_v8, -inf  ;;  %v247_v14 = vmax.f32 %v219_v3, %v223_v7 }
  0x16   : > { %v238_v15 = vmax.f32 %v234_v9, %v237_v13  ;;  %v248_v16 = vsel %vm1259_vm0, %v225_v11, -inf  ;;  %v1271_v13 = vmov 0 }
  0x17   : > { %v249_v17 = vmax.f32 %v246_v10, %v248_v16  ;;  %v1275_v16 = vmov 0 }
  0x18   : > { %v239_v18 = vmax.f32 %v238_v15, %v235_v12 }
  0x19   : > { %v250_v19 = vmax.f32 %v249_v17, %v247_v14  ;;  %v1273_v14 = vmov 0 }
  0x1a   : > { %v240_v20 = vrot.slane %v239_v18, 4 }
  0x1b   : > { %v251_v21 = vrot.slane %v250_v19, 4 }
  0x1c   : > { %v241_v22 = vmax.f32 %v239_v18, %v240_v20  ;;  %v1281_v20 = vmov 0 }
  0x1d   : > { %v252_v24 = vmax.f32 %v250_v19, %v251_v21  ;;  %v1279_v19 = vmov 0 }
  0x1e   : > { %v242_v25 = vrot.slane %v241_v22, 2 }
  0x1f   : > { %v253_v26 = vrot.slane %v252_v24, 2 }
  0x20   : > { %v243_v27 = vmax.f32 %v241_v22, %v242_v25  ;;  %v1283_v22 = vmov 0 }
  0x21   : > { %v254_v29 = vmax.f32 %v252_v24, %v253_v26  ;;  %v1285_v24 = vmov 0 }
  0x22   : > { %v244_v30 = vrot.slane %v243_v27, 1 }
  0x23   : > { %v255_v31 = vrot.slane %v254_v29, 1 }
  0x24   : > { %v245_v33 = vmax.f32 %v243_v27, %v244_v30 }
  0x25   : > { %v256_v37 = vmax.f32 %v254_v29, %v255_v31 }
  0x26   : > { %vm257_vm1 = vcmp.eq.f32.partialorder %v216_v0, %v245_v33  ;;  %vm259_vm2 = vcmp.eq.f32.partialorder %v218_v2, %v245_v33  ;;  %vm261_vm3 = vcmp.eq.f32.partialorder %v220_v4, %v245_v33  ;;  %vm263_vm4 = vcmp.eq.f32.partialorder %v222_v6, %v245_v33 }
  0x27   : > { %vm258_vm5 = vcmp.eq.f32.partialorder %v217_v1, %v256_v37  ;;  %vm260_vm6 = vcmp.eq.f32.partialorder %v219_v3, %v256_v37  ;;  %vm262_vm7 = vcmp.eq.f32.partialorder %v221_v5, %v256_v37  ;;  %vm264_vm8 = vcmp.eq.f32.partialorder %v223_v7, %v256_v37 }
  0x28   : > { %vm265_vm9 = vcmp.eq.f32.partialorder %v224_v8, %v245_v33  ;;  %vm266_vm10 = vcmp.eq.f32.partialorder %v225_v11, %v256_v37  ;;  %v267_v38 = vsel %vm257_vm1, %v851_v28, 34  ;;  %v268_v39 = vsel %vm258_vm5, %v851_v28, 34 }
  0x29   : > { %v269_v40 = vsel %vm259_vm2, %v854_v32, 34  ;;  %v270_v41 = vsel %vm260_vm6, %v854_v32, 34  ;;  %v271_v42 = vsel %vm261_vm3, %v857_v34, 34  ;;  %v272_v43 = vsel %vm262_vm7, %v857_v34, 34 }
  0x2a   : > { %v273_v44 = vsel %vm263_vm4, %v860_v35, 34  ;;  %v274_v45 = vsel %vm264_vm8, %v860_v35, 34  ;;  %v275_v46 = vsel %vm265_vm9, %v863_v36, 34  ;;  %v276_v47 = vsel %vm266_vm10, %v863_v36, 34 }
  0x2b   : > { %vm277_vm11 = vcmp.lt.s32.totalorder %v267_v38, %v271_v42  ;;  %vm279_vm12 = vcmp.lt.s32.totalorder %v269_v40, %v273_v44  ;;  %v281_v48 = vsel %vm1259_vm0, %v275_v46, 2147483647  ;;  %vm295_vm13 = vcmp.lt.s32.totalorder %v268_v39, %v272_v43 }
  0x2c   : > { %v278_v50 = vsel %vm277_vm11, %v267_v38, %v271_v42  ;;  %v280_v51 = vsel %vm279_vm12, %v269_v40, %v273_v44  ;;  %v296_v52 = vsel %vm295_vm13, %v268_v39, %v272_v43  ;;  %vm297_vm14 = vcmp.lt.s32.totalorder %v270_v41, %v274_v45 }
  0x2d   : > { %vm282_vm15 = vcmp.lt.s32.totalorder %v278_v50, %v281_v48  ;;  %v298_v53 = vsel %vm297_vm14, %v270_v41, %v274_v45  ;;  %v299_v54 = vsel %vm1259_vm0, %v276_v47, 2147483647  ;;  %vm227_vm2 = vcmp.ne.s32.totalorder %v226_v49, 4294967295 }
  0x2e   : > { %v283_v55 = vsel %vm282_vm15, %v278_v50, %v281_v48  ;;  %vm300_vm1 = vcmp.lt.s32.totalorder %v296_v52, %v299_v54  ;;  %v323_v63 = vsel %vm227_vm2, 1, %v809_v62  ;;  %v330_v0 = vsub.s32 1, %v851_v28 }
  0x2f   : > { %vm284_vm3 = vcmp.lt.s32.totalorder %v283_v55, %v280_v51  ;;  %v301_v56 = vsel %vm300_vm1, %v296_v52, %v299_v54  ;;  %v884_v4 = vrot.slane %v323_v63, %v326_v60  ;;  %v886_v5 = vrot.slane %v226_v49, %v326_v60 }
  0x30   : > { %v285_v57 = vsel %vm284_vm3, %v283_v55, %v280_v51  ;;  %vm302_vm4 = vcmp.lt.s32.totalorder %v301_v56, %v298_v53  ;;  %v888_v7 = vrot.slane %v323_v63, %v330_v0  ;;  %v890_v8 = vrot.slane %v226_v49, %v330_v0 }
  0x31   : > { %v286_v58 = vrot.slane %v285_v57, 4  ;;  %v303_v59 = vsel %vm302_vm4, %v301_v56, %v298_v53  ;;  %vm354_vm8 = vcmp.eq.s32.totalorder %v854_v32, %v886_v5  ;;  %vm1263_vm11 = vcmp.eq.s32.totalorder %v884_v4, 1 }
  0x32   : > { %v304_v61 = vrot.slane %v303_v59, 4  ;;  %vm355_vm10 = vcmp.eq.s32.totalorder %v854_v32, %v890_v8  ;;  %vm352_vm12 = vcmp.eq.s32.totalorder %v851_v28, %v886_v5  ;;  %vm1262_vm13 = vcmp.eq.s32.totalorder %v888_v7, 1  ;;  %vm902_vm14 = vmand %vm354_vm8, %vm1263_vm11 }
  0x33   : > { %vm287_vm5 = vcmp.lt.s32.totalorder %v285_v57, %v286_v58  ;;  %v1272_v13 = vsel %vm902_vm14, 4294967295, %v1271_v13  ;;  %vm353_vm15 = vcmp.eq.s32.totalorder %v851_v28, %v890_v8  ;;  %vm910_vm2 = vmand %vm355_vm10, %vm1262_vm13  ;;  %vm357_vm8 = vcmp.eq.s32.totalorder %v857_v34, %v890_v8 }
  0x34   : > { %v288_v1 = vsel %vm287_vm5, %v285_v57, %v286_v58  ;;  %vm305_vm6 = vcmp.lt.s32.totalorder %v303_v59, %v304_v61  ;;  %v1274_v14 = vsel %vm910_vm2, 4294967295, %v1273_v14  ;;  %vm918_vm4 = vmand %vm352_vm12, %vm1263_vm11  ;;  %vm356_vm5 = vcmp.eq.s32.totalorder %v857_v34, %v886_v5 }
  0x35   : > { %v289_v2 = vrot.slane %v288_v1, 2  ;;  %v306_v3 = vsel %vm305_vm6, %v303_v59, %v304_v61  ;;  %v1276_v16 = vsel %vm918_vm4, 4294967295, %v1275_v16  ;;  %vm358_vm12 = vcmp.eq.s32.totalorder %v860_v35, %v886_v5  ;;  %vm972_vm0 = vmand %vm357_vm8, %vm1262_vm13 }
  0x36   : > { %v307_v6 = vrot.slane %v306_v3, 2  ;;  %v1286_v24 = vsel %vm972_vm0, 4294967295, %v1285_v24  ;;  %vm1296_vm2 = vcmp.eq.s32.totalorder %v884_v4, 1  ;;  %vm1299_vm14 = vcmp.eq.s32.totalorder %v888_v7, 1 }
  0x37   : > { %vm290_vm7 = vcmp.lt.s32.totalorder %v288_v1, %v289_v2 }
  0x38   : > { %v291_v9 = vsel %vm290_vm7, %v288_v1, %v289_v2  ;;  %vm308_vm9 = vcmp.lt.s32.totalorder %v306_v3, %v307_v6  ;;  %vm930_vm7 = vmand %vm353_vm15, %vm1262_vm13 }
  0x39   : > { %v292_v10 = vrot.slane %v291_v9, 1  ;;  %v309_v11 = vsel %vm308_vm9, %v306_v3, %v307_v6 }
  0x3a   : > { %v310_v12 = vrot.slane %v309_v11, 1 }
  0x3b   : > { %vm293_vm1 = vcmp.lt.s32.totalorder %v291_v9, %v292_v10 }
  0x3c   : > { %v914_v15 = vsel %vm293_vm1, %v291_v9, %v292_v10  ;;  %vm311_vm3 = vcmp.lt.s32.totalorder %v309_v11, %v310_v12 }
  0x3d   : > { %v924_v17 = vsel %vm311_vm3, %v309_v11, %v310_v12  ;;  %vm315_vm6 = vcmp.eq.s32.totalorder %v854_v32, %v914_v15  ;;  %vm313_vm1 = vcmp.eq.s32.totalorder %v851_v28, %v914_v15  ;;  %vm959_vm3 = vmand %vm356_vm5, %vm1263_vm11 }
  0x3e   : > { %vm316_vm9 = vcmp.eq.s32.totalorder %v854_v32, %v924_v17  ;;  %vm940_vm10 = vmand %vm315_vm6, %vm1263_vm11  ;;  %v1284_v22 = vsel %vm959_vm3, 4294967295, %v1283_v22  ;;  %vm359_vm6 = vcmp.eq.s32.totalorder %v860_v35, %v890_v8 }
  0x3f   : > { %v1280_v19 = vsel %vm940_vm10, 4294967295, %v1279_v19  ;;  %vm948_vm15 = vmand %vm316_vm9, %vm1262_vm13  ;;  %v461_v21 = vsel %vm940_vm10, 1, %v809_v62  ;;  %vm314_vm9 = vcmp.eq.s32.totalorder %v851_v28, %v924_v17 }
  0x40   : > { %v1282_v20 = vsel %vm948_vm15, 4294967295, %v1281_v20  ;;  %v462_v23 = vsel %vm948_vm15, 1, %v809_v62  ;;  %vm978_vm5 = vmand %vm358_vm12, %vm1263_vm11  ;;  %vm1295_vm12 = vnez %v1276_v16  ;;  %vm318_vm15 = vcmp.eq.s32.totalorder %v857_v34, %v924_v17 }
  0x41   : > { %v482_v25 = vadd.s32 %v462_v23, %v461_v21  ;;  %vm984_vm3 = vmand %vm313_vm1, %vm1263_vm11  ;;  %vm317_vm11 = vcmp.eq.s32.totalorder %v857_v34, %v914_v15 }
  0x42   : > { %vm990_vm4 = vmand %vm359_vm6, %vm1262_vm13  ;;  %v459_v31 = vsel %vm984_vm3, 1, %v809_v62  ;;  %vm319_vm6 = vcmp.eq.s32.totalorder %v860_v35, %v914_v15 }
  0x43   : > { %v484_v29 = vshrl.u32 %v482_v25, 16  ;;  %vm1004_vm1 = vmand %vm314_vm9, %vm1262_vm13  ;;  %vm320_vm9 = vcmp.eq.s32.totalorder %v860_v35, %v924_v17  ;;  %v483_v54 = vand.u32 65535, %v482_v25  ;;  %v543_v16 = vsel %vm990_vm4, 1, %v809_v62 }
  0x44   : > { %v460_v32 = vsel %vm1004_vm1, 1, %v809_v62  ;;  %vm372_vm13 = vmand %vm984_vm3, %vm1295_vm12 }
  0x45   : > { %v486_v33 = vcvt.s32.f32 %v484_v29  ;;  %v469_v37 = vadd.s32 %v460_v32, %v459_v31  ;;  %vm1030_vm8 = vmand %vm319_vm6, %vm1296_vm2  ;;  %v382_v45 = vsel %vm372_vm13, 1, %v809_v62  ;;  %v485_v1 = vcvt.s32.f32 %v483_v54 }
  0x46   : > { %vm1038_vm10 = vmand %vm320_vm9, %vm1299_vm14  ;;  %v465_v40 = vsel %vm1030_vm8, 1, %v809_v62 }
  0x47   : > { %489 = vadd.xlane.f32.xlu1 %v486_v33  ;;  %v471_v35 = vshrl.u32 %v469_v37, 16  ;;  %v466_v41 = vsel %vm1038_vm10, 1, %v809_v62  ;;  %vm338_vm3 = vmand %vm317_vm11, %vm1296_vm2  ;;  %vm1304_vm11 = vnez %v1284_v22  ;;  %v470_v49 = vand.u32 65535, %v469_v37 }
  0x48   : > { %v1050_v42 = vadd.s32 %v466_v41, %v465_v40  ;;  %vm1302_vm6 = vmmov %vm1299_vm14  ;;  %v463_v43 = vsel %vm338_vm3, 1, %v809_v62 }
  0x49   : > { %v473_v34 = vcvt.s32.f32 %v471_v35  ;;  %vm339_vm14 = vmand %vm318_vm15, %vm1302_vm6  ;;  %vm1306_vm6 = vnez %v1272_v13  ;;  %v472_v59 = vcvt.s32.f32 %v470_v49 }
  0x4a   : > { %v464_v44 = vsel %vm339_vm14, 1, %v809_v62  ;;  %vm1303_vm9 = vmand %vm1004_vm1, %vm930_vm7  ;;  %v510_v47 = vshrl.u32 %v1050_v42, 16  ;;  %v509_v54 = vand.u32 65535, %v1050_v42 }
  0x4b   : > { %v383_v46 = vsel %vm1303_vm9, 1, %v809_v62  ;;  %vm376_vm2 = vmand %vm338_vm3, %vm1304_vm11  ;;  %476 = vadd.xlane.f32.xlu0 %v473_v34  ;;  %v495_v48 = vadd.s32 %v464_v44, %v463_v43  ;;  %vm1305_vm3 = vnez %v1280_v19  ;;  %vm1308_vm9 = vnez %v1282_v20 }
  0x4c   : > { %vm377_vm15 = vmand %vm339_vm14, %vm972_vm0  ;;  %v386_v50 = vsel %vm376_vm2, 1, %v809_v62  ;;  %v512_v52 = vcvt.s32.f32 %v510_v47  ;;  %v392_v55 = vadd.s32 %v383_v46, %v382_v45  ;;  %vm1317_vm0 = vcmp.eq.s32.totalorder %v888_v7, 1 }
  0x4d   : > { %v387_v51 = vsel %vm377_vm15, 1, %v809_v62  ;;  %vm378_vm13 = vmand %vm1030_vm8, %vm978_vm5  ;;  %v497_v53 = vshrl.u32 %v495_v48, 16  ;;  %vm1309_vm8 = vnez %v1274_v14  ;;  %vm360_vm15 = vcmp.eq.s32.totalorder %v863_v36, %v886_v5 }
  0x4e   : > { %vm379_vm1 = vmand %vm1038_vm10, %vm990_vm4  ;;  %515 = vadd.xlane.f32.xlu1 %v512_v52  ;;  %v496_v60 = vand.u32 65535, %v495_v48  ;;  %v418_v61 = vadd.s32 %v387_v51, %v386_v50  ;;  %v388_v63 = vsel %vm378_vm13, 1, %v809_v62  ;;  %vm321_vm10 = vcmp.eq.s32.totalorder %v863_v36, %v914_v15 }
  0x4f   : > { %vm1307_vm14 = vmand %vm1305_vm3, %vm1306_vm6  ;;  %v499_v58 = vcvt.s32.f32 %v497_v53  ;;  %v389_v0 = vsel %vm379_vm1, 1, %v809_v62  ;;  %v394_v2 = vshrl.u32 %v392_v55, 16  ;;  %vm322_vm3 = vcmp.eq.s32.totalorder %v863_v36, %v924_v17 }
  0x50   : > { %v384_v56 = vsel %vm1307_vm14, 1, %v809_v62  ;;  %vm1310_vm2 = vmand %vm1308_vm9, %vm1309_vm8  ;;  %vm361_vm14 = vcmp.eq.s32.totalorder %v863_v36, %v890_v8  ;;  %vm1311_vm9 = vcmp.eq.s32.totalorder %v884_v4, 1  ;;  %v498_v9 = vcvt.s32.f32 %v496_v60 }
  0x51   : > { %v385_v57 = vsel %vm1310_vm2, 1, %v809_v62  ;;  %502 = vadd.xlane.f32.xlu0 %v499_v58  ;;  %vm1105_vm13 = vmand %vm360_vm15, %vm1311_vm9  ;;  %v420_v10 = vshrl.u32 %v418_v61, 16  ;;  %v431_v11 = vadd.s32 %v389_v0, %v388_v63  ;;  %v396_v36 = vcvt.s32.f32 %v394_v2 }
  0x52   : > { %v405_v3 = vadd.s32 %v385_v57, %v384_v56  ;;  %474 = vadd.xlane.f32.xlu1 %v472_v59  ;;  %vm1314_vm1 = vmmov %vm1311_vm9  ;;  %v393_v29 = vand.u32 65535, %v392_v55  ;;  %v419_v40 = vand.u32 65535, %v418_v61  ;;  %v538_v46 = vsel %vm1306_vm6, 1, %v809_v62 }
  0x53   : > { %vm1111_vm2 = vmand %vm321_vm10, %vm1314_vm1  ;;  %v422_v4 = vcvt.s32.f32 %v420_v10  ;;  %v433_v17 = vshrl.u32 %v431_v11, 16  ;;  %v432_v33 = vand.u32 65535, %v431_v11  ;;  %v539_v47 = vsel %vm1309_vm8, 1, %v809_v62 }
  0x54   : > { %vm1117_vm11 = vmand %vm322_vm3, %vm1317_vm0  ;;  %v407_v5 = vshrl.u32 %v405_v3, 16  ;;  %v467_v19 = vsel %vm1111_vm2, 1, %v809_v62  ;;  %v406_v21 = vand.u32 65535, %v405_v3  ;;  %vm1323_vm3 = vcmask 1041408  }
  0x55   : > { %487 = vadd.xlane.f32.xlu0 %v485_v1  ;;  %vm1320_vm15 = vmmov %vm1317_vm0  ;;  %v468_v20 = vsel %vm1117_vm11, 1, %v809_v62  ;;  %v521_v23 = vsel %vm1323_vm3, %v467_v19, 0  ;;  %v435_v27 = vcvt.s32.f32 %v433_v17  ;;  %v395_v39 = vcvt.s32.f32 %v393_v29 }
  0x56   : > { %vm1123_vm9 = vmand %vm361_vm14, %vm1320_vm15  ;;  %500 = vadd.xlane.f32.xlu1 %v498_v9  ;;  %v409_v7 = vcvt.s32.f32 %v407_v5  ;;  %v408_v32 = vcvt.s32.f32 %v406_v21  ;;  %v434_v41 = vcvt.s32.f32 %v432_v33  ;;  %v421_v44 = vcvt.s32.f32 %v419_v40 }
  0x57   : > { %vm380_vm0 = vmand %vm1111_vm2, %vm1105_vm13  ;;  %v536_v50 = vsel %vm1295_vm12, 1, %v809_v62  ;;  %v537_v51 = vsel %vm930_vm7, 1, %v809_v62  ;;  %v559_v52 = vadd.s32 %v539_v47, %v538_v46  ;;  %v542_v14 = vsel %vm978_vm5, 1, %v809_v62 }
  0x58   : > { %vm381_vm10 = vmand %vm1117_vm11, %vm1123_vm9  ;;  %v390_v30 = vsel %vm380_vm0, 1, %v809_v62  ;;  %v546_v55 = vadd.s32 %v537_v51, %v536_v50  ;;  %vm1327_vm7 = vnez %v1284_v22  ;;  %vm1328_vm5 = vnez %v1286_v24 }
  0x59   : > { %399 = vadd.xlane.f32.xlu0 %v396_v36  ;;  %vm1324_vm14 = vmmov %vm1323_vm3  ;;  %v391_v31 = vsel %vm381_vm10, 1, %v809_v62  ;;  %v561_v56 = vshrl.u32 %v559_v52, 16  ;;  %v540_v57 = vsel %vm1327_vm7, 1, %v809_v62  ;;  %v541_v26 = vsel %vm1328_vm5, 1, %v809_v62 }
  0x5a   : > { %v522_v25 = vsel %vm1324_vm14, %v468_v20, 0  ;;  %425 = vadd.xlane.f32.xlu1 %v422_v4  ;;  %vm1325_vm11 = vmmov %vm1323_vm3  ;;  %vm209_vm12 = vcmask 64512   ;;  %v585_v58 = vadd.s32 %v543_v16, %v542_v14  ;;  %v544_v59 = vsel %vm1105_vm13, 1, %v809_v62 }
  0x5b   : > { %v523_v37 = vadd.s32 %v522_v25, %v521_v23  ;;  %v444_v38 = vsel %vm1325_vm11, %v390_v30, 0  ;;  %vm1326_vm1 = vmmov %vm1323_vm3  ;;  %v545_v42 = vsel %vm1123_vm9, 1, %v809_v62  ;;  %211 = vst.msk [vmem:[%s1163_s24 + $0x8] sm:$0xff] %vm209_vm12, %v809_v62  ;;  %v511_v22 = vcvt.s32.f32 %v509_v54 }
  0x5c   : > { %v445_v35 = vsel %vm1326_vm1, %v391_v31, 0  ;;  %210 = vst.msk [vmem:[%s1163_s24] sm:$0xff] %vm209_vm12, %v809_v62  ;;  %212 = vst.msk [vmem:[%s1163_s24 + $0x10] sm:$0xff] %vm209_vm12, %v809_v62  ;;  %v548_v24 = vshrl.u32 %v546_v55, 16  ;;  %v572_v60 = vadd.s32 %v541_v26, %v540_v57  ;;  %v563_v0 = vcvt.s32.f32 %v561_v56 }
  0x5d   : > { %412 = vadd.xlane.f32.xlu0 %v409_v7  ;;  %v525_v34 = vshrl.u32 %v523_v37, 16  ;;  %v446_v43 = vadd.s32 %v445_v35, %v444_v38  ;;  %v524_v45 = vand.u32 65535, %v523_v37  ;;  %213 = vst.msk [vmem:[%s1163_s24 + $0x18] sm:$0xff] %vm209_vm12, %v809_v62  ;;  %vm1329_vm4 = vmmov %vm1326_vm1  ;;  %v587_v1 = vshrl.u32 %v585_v58, 16 }
  0x5e   : > { %438 = vadd.xlane.f32.xlu1 %v435_v27  ;;  %v598_v61 = vsel %vm1329_vm4, %v544_v59, 0  ;;  %vm1330_vm6 = vmmov %vm1326_vm1  ;;  %v550_v2 = vcvt.s32.f32 %v548_v24  ;;  %v574_v3 = vshrl.u32 %v572_v60, 16  ;;  %v547_v10 = vand.u32 65535, %v546_v55 }
  0x5f   : > { %v527_v48 = vcvt.s32.f32 %v525_v34  ;;  %v448_v49 = vshrl.u32 %v446_v43, 16  ;;  %v526_v13 = vcvt.s32.f32 %v524_v45  ;;  %v447_v53 = vand.u32 65535, %v446_v43 }
  0x60   : > { %v599_v63 = vsel %vm1330_vm6, %v545_v42, 0  ;;  %v589_v9 = vcvt.s32.f32 %v587_v1  ;;  %v576_v11 = vcvt.s32.f32 %v574_v3  ;;  %v549_v8 = vcvt.s32.f32 %v547_v10 }
  0x61   : > { %410 = vadd.xlane.f32.xlu0 %v408_v32  ;;  %v450_v18 = vcvt.s32.f32 %v448_v49  ;;  %v449_v28 = vcvt.s32.f32 %v447_v53  ;;  %v600_v6 = vadd.s32 %v599_v63, %v598_v61  ;;  %v573_v36 = vand.u32 65535, %v572_v60 }
  0x62   : > { %397 = vadd.xlane.f32.xlu1 %v395_v39  ;;  %v560_v15 = vand.u32 65535, %v559_v52  ;;  %vm214_vm8 = vcmask 58368   ;;  %v586_v20 = vand.u32 65535, %v585_v58  ;;  %vm623_vm13 = vcmask 7168  }
  0x63   : > { %v602_v12 = vshrl.u32 %v600_v6, 16  ;;  %v575_v4 = vcvt.s32.f32 %v573_v36  ;;  %v601_v17 = vand.u32 65535, %v600_v6  ;;  %215 = vst.msk [vmem:[%s1163_s24 + $0x20] sm:$0x3] %vm214_vm8, %v809_v62  ;;  %v613_v51 = vld [vmem:[%s1163_s24] sm:$0xff]  ;;  %v615_v59 = vld [vmem:[%s1163_s24 + $0x10] sm:$0xff] }
  0x64   : > { %v562_v19 = vcvt.s32.f32 %v560_v15  ;;  %v588_v21 = vcvt.s32.f32 %v586_v20  ;;  %vm640_vm2 = vcmask 15368   ;;  %vm628_vm15 = vcmask 1024  }
  0x65   : > { %436 = vadd.xlane.f32.xlu0 %v434_v41  ;;  %v604_v5 = vcvt.s32.f32 %v602_v12  ;;  %v603_v7 = vcvt.s32.f32 %v601_v17  ;;  %vm645_vm9 = vcmask 9224   ;;  %vm657_vm0 = vcmask 23568  }
  0x66   : > { %423 = vadd.xlane.f32.xlu1 %v421_v44  ;;  %v614_v44 = vld [vmem:[%s1163_s24 + $0x8] sm:$0xff]  ;;  %vm662_vm10 = vcmask 17424  }
  0x69   : > { %530 = vadd.xlane.f32.xlu0 %v527_v48 }
  0x6a   : > { %528 = vadd.xlane.f32.xlu1 %v526_v13  ;;  %v617_v20 = vld [vmem:[%s1163_s24 + $0x20] sm:$0x3] }
  0x6d   : > { %453 = vadd.xlane.f32.xlu0 %v450_v18  ;;  %v616_v18 = vld [vmem:[%s1163_s24 + $0x18] sm:$0xff] }
  0x6e   : > { %451 = vadd.xlane.f32.xlu1 %v449_v28 }
  0x71   : > { %513 = vadd.xlane.f32.xlu0 %v511_v22 }
  0x72   : > { %566 = vadd.xlane.f32.xlu1 %v563_v0 }
  0x75   : > { %553 = vadd.xlane.f32.xlu0 %v550_v2 }
  0x76   : > { %592 = vadd.xlane.f32.xlu1 %v589_v9 }
  0x79   : > { %579 = vadd.xlane.f32.xlu0 %v576_v11 }
  0x7a   : > { %551 = vadd.xlane.f32.xlu1 %v549_v8 }
  0x7d   : > { %607 = vadd.xlane.f32.xlu0 %v604_v5 }
  0x7e   : > { %577 = vadd.xlane.f32.xlu1 %v575_v4 }
  0x81   : > { %564 = vadd.xlane.f32.xlu0 %v562_v19 }
  0x82   : > { %605 = vadd.xlane.f32.xlu1 %v603_v7 }
  0x85   : > { %590 = vadd.xlane.f32.xlu0 %v588_v21 }
  0xd4   : > { %v490_v23 = vpop.xlane.xlu1 %489 }
  0xd5   : > { %v492_v16 = vcvt.f32.s32 %v490_v23 }
  0xd7   : > { %v493_v63 = vshll.u32 %v492_v16, 16 }
  0xd8   : > { %v477_v25 = vpop.xlane.xlu0 %476 }
  0xd9   : > { %v479_v28 = vcvt.f32.s32 %v477_v25 }
  0xdb   : > { %v1196_v27 = vpop.xlane.xlu1 %515  ;;  %v480_v1 = vshll.u32 %v479_v28, 16 }
  0xdc   : > { %v518_v2 = vcvt.f32.s32 %v1196_v27 }
  0xde   : > { %v1198_v29 = vpop.xlane.xlu0 %502  ;;  %v519_v17 = vshll.u32 %v518_v2, 16 }
  0xdf   : > { %v475_v30 = vpop.xlane.xlu1 %474  ;;  %v505_v6 = vcvt.f32.s32 %v1198_v29 }
  0xe0   : > { %v478_v60 = vcvt.f32.s32 %v475_v30 }
  0xe1   : > { %v506_v21 = vshll.u32 %v505_v6, 16 }
  0xe2   : > { %v488_v31 = vpop.xlane.xlu0 %487  ;;  %v481_v11 = vadd.s32 %v480_v1, %v478_v60 }
  0xe3   : > { %v1200_v32 = vpop.xlane.xlu1 %500  ;;  %v491_v42 = vcvt.f32.s32 %v488_v31 }
  0xe4   : > { %v504_v36 = vcvt.f32.s32 %v1200_v32 }
  0xe5   : > { %v494_v9 = vadd.s32 %v493_v63, %v491_v42 }
  0xe6   : > { %v400_v62 = vpop.xlane.xlu0 %399  ;;  %v507_v30 = vadd.s32 %v506_v21, %v504_v36 }
  0xe7   : > { %v426_v33 = vpop.xlane.xlu1 %425  ;;  %v402_v39 = vcvt.f32.s32 %v400_v62 }
  0xe8   : > { %v428_v47 = vcvt.f32.s32 %v426_v33 }
  0xe9   : > { %v403_v46 = vshll.u32 %v402_v39, 16 }
  0xea   : > { %v413_v37 = vpop.xlane.xlu0 %412  ;;  %v429_v55 = vshll.u32 %v428_v47, 16 }
  0xeb   : > { %v415_v38 = vcvt.f32.s32 %v413_v37  ;;  %v439_v35 = vpop.xlane.xlu1 %438 }
  0xec   : > { %v441_v34 = vcvt.f32.s32 %v439_v35 }
  0xed   : > { %v416_v41 = vshll.u32 %v415_v38, 16 }
  0xee   : > { %v411_v40 = vpop.xlane.xlu0 %410  ;;  %v442_v52 = vshll.u32 %v441_v34, 16 }
  0xef   : > { %v414_v43 = vcvt.f32.s32 %v411_v40  ;;  %v398_v45 = vpop.xlane.xlu1 %397 }
  0xf0   : > { %v401_v49 = vcvt.f32.s32 %v398_v45 }
  0xf1   : > { %v417_v48 = vadd.s32 %v416_v41, %v414_v43 }
  0xf2   : > { %v437_v50 = vpop.xlane.xlu0 %436  ;;  %v404_v14 = vadd.s32 %v403_v46, %v401_v49 }
  0xf3   : > { %v619_v13 = vadd.s32 %v614_v44, %v417_v48  ;;  %v440_v53 = vcvt.f32.s32 %v437_v50  ;;  %v424_v54 = vpop.xlane.xlu1 %423 }
  0xf4   : > { %v618_v57 = vadd.s32 %v613_v51, %v404_v14  ;;  %v427_v26 = vcvt.f32.s32 %v424_v54 }
  0xf5   : > { %625 = vst.msk [vmem:[%s1163_s24 + $0x8] sm:$0xff] %vm623_vm13, %v619_v13  ;;  %v443_v56 = vadd.s32 %v442_v52, %v440_v53 }
  0xf6   : > { %v531_v58 = vpop.xlane.xlu0 %530  ;;  %624 = vst.msk [vmem:[%s1163_s24] sm:$0xff] %vm623_vm13, %v618_v57  ;;  %v430_v24 = vadd.s32 %v429_v55, %v427_v26 }
  0xf7   : > { %v621_v22 = vadd.s32 %v616_v18, %v443_v56  ;;  %v529_v61 = vpop.xlane.xlu1 %528  ;;  %v533_v38 = vcvt.f32.s32 %v531_v58 }
  0xf8   : > { %v620_v0 = vadd.s32 %v615_v59, %v430_v24  ;;  %v532_v41 = vcvt.f32.s32 %v529_v61 }
  0xf9   : > { %627 = vst.msk [vmem:[%s1163_s24 + $0x18] sm:$0xff] %vm623_vm13, %v621_v22  ;;  %v534_v44 = vshll.u32 %v533_v38, 16 }
  0xfa   : > { %v454_v3 = vpop.xlane.xlu0 %453  ;;  %626 = vst.msk [vmem:[%s1163_s24 + $0x10] sm:$0xff] %vm623_vm13, %v620_v0 }
  0xfb   : > { %v456_v10 = vcvt.f32.s32 %v454_v3  ;;  %v452_v12 = vpop.xlane.xlu1 %451  ;;  %v535_v46 = vadd.s32 %v534_v44, %v532_v41 }
  0xfc   : > { %v631_v8 = vld [vmem:[%s1163_s24 + $0x8] sm:$0xff]  ;;  %v455_v15 = vcvt.f32.s32 %v452_v12 }
  0xfd   : > { %v457_v5 = vshll.u32 %v456_v10, 16  ;;  %v636_v4 = vadd.s32 %v631_v8, %v494_v9  ;;  %v630_v7 = vld [vmem:[%s1163_s24] sm:$0xff] }
  0xfe   : > { %v514_v19 = vpop.xlane.xlu0 %513  ;;  %v635_v27 = vadd.s32 %v630_v7, %v481_v11 }
  0xff   : > { %v517_v23 = vcvt.f32.s32 %v514_v19  ;;  %v458_v25 = vadd.s32 %v457_v5, %v455_v15  ;;  %642 = vst.msk [vmem:[%s1163_s24 + $0x8] sm:$0xff] %vm640_vm2, %v636_v4  ;;  %v567_v29 = vpop.xlane.xlu1 %566 }
 0x100   : > { %641 = vst.msk [vmem:[%s1163_s24] sm:$0xff] %vm640_vm2, %v635_v27  ;;  %v633_v62 = vld [vmem:[%s1163_s24 + $0x18] sm:$0xff]  ;;  %v569_v13 = vcvt.f32.s32 %v567_v29 }
 0x101   : > { %v520_v31 = vadd.s32 %v519_v17, %v517_v23  ;;  %v622_v32 = vadd.s32 %v617_v20, %v458_v25  ;;  %v632_v37 = vld [vmem:[%s1163_s24 + $0x10] sm:$0xff] }
 0x102   : > { %v554_v33 = vpop.xlane.xlu0 %553  ;;  %v637_v39 = vadd.s32 %v632_v37, %v507_v30  ;;  %v570_v26 = vshll.u32 %v569_v13, 16 }
 0x103   : > { %v638_v35 = vadd.s32 %v633_v62, %v520_v31  ;;  %629 = vst.msk [vmem:[%s1163_s24 + $0x20] sm:$0x3] %vm628_vm15, %v622_v32  ;;  %v593_v40 = vpop.xlane.xlu1 %592  ;;  %v556_v34 = vcvt.f32.s32 %v554_v33 }
 0x104   : > { %643 = vst.msk [vmem:[%s1163_s24 + $0x10] sm:$0xff] %vm640_vm2, %v637_v39  ;;  %v595_v28 = vcvt.f32.s32 %v593_v40 }
 0x105   : > { %644 = vst.msk [vmem:[%s1163_s24 + $0x18] sm:$0xff] %vm640_vm2, %v638_v35  ;;  %v557_v47 = vshll.u32 %v556_v34, 16 }
 0x106   : > { %v580_v43 = vpop.xlane.xlu0 %579  ;;  %v648_v0 = vld [vmem:[%s1163_s24 + $0x8] sm:$0xff]  ;;  %v596_v2 = vshll.u32 %v595_v28, 16 }
 0x107   : > { %v552_v45 = vpop.xlane.xlu1 %551  ;;  %v582_v48 = vcvt.f32.s32 %v580_v43  ;;  %v647_v14 = vld [vmem:[%s1163_s24] sm:$0xff] }
 0x108   : > { %v555_v49 = vcvt.f32.s32 %v552_v45 }
 0x109   : > { %v583_v18 = vshll.u32 %v582_v48, 16 }
 0x10a   : > { %v634_v50 = vld [vmem:[%s1163_s24 + $0x20] sm:$0x3]  ;;  %v608_v51 = vpop.xlane.xlu0 %607  ;;  %v558_v53 = vadd.s32 %v557_v47, %v555_v49 }
 0x10b   : > { %v639_v52 = vadd.s32 %v634_v50, %v535_v46  ;;  %v578_v16 = vpop.xlane.xlu1 %577  ;;  %v610_v54 = vcvt.f32.s32 %v608_v51  ;;  %v649_v42 = vld [vmem:[%s1163_s24 + $0x10] sm:$0xff] }
 0x10c   : > { %v652_v55 = vadd.s32 %v647_v14, %v558_v53  ;;  %v581_v56 = vcvt.f32.s32 %v578_v16  ;;  %v650_v8 = vld [vmem:[%s1163_s24 + $0x18] sm:$0xff] }
 0x10d   : > { %646 = vst.msk [vmem:[%s1163_s24 + $0x20] sm:$0x3] %vm645_vm9, %v639_v52  ;;  %v611_v24 = vshll.u32 %v610_v54, 16 }
 0x10e   : > { %v565_v57 = vpop.xlane.xlu0 %564  ;;  %658 = vst.msk [vmem:[%s1163_s24] sm:$0xff] %vm657_vm0, %v652_v55  ;;  %v584_v59 = vadd.s32 %v583_v18, %v581_v56 }
 0x10f   : > { %v568_v58 = vcvt.f32.s32 %v565_v57  ;;  %v606_v22 = vpop.xlane.xlu1 %605 }
 0x110   : > { %v654_v61 = vadd.s32 %v649_v42, %v584_v59  ;;  %v609_v63 = vcvt.f32.s32 %v606_v22 }
 0x111   : > { %v571_v60 = vadd.s32 %v570_v26, %v568_v58 }
 0x112   : > { %v591_v1 = vpop.xlane.xlu0 %590  ;;  %660 = vst.msk [vmem:[%s1163_s24 + $0x10] sm:$0xff] %vm657_vm0, %v654_v61  ;;  %v612_v9 = vadd.s32 %v611_v24, %v609_v63 }
 0x113   : > { %v653_v3 = vadd.s32 %v648_v0, %v571_v60  ;;  %v594_v6 = vcvt.f32.s32 %v591_v1 }
 0x114   : > { %v651_v10 = vld [vmem:[%s1163_s24 + $0x20] sm:$0x3] }
 0x115   : > { %659 = vst.msk [vmem:[%s1163_s24 + $0x8] sm:$0xff] %vm657_vm0, %v653_v3  ;;  %v597_v11 = vadd.s32 %v596_v2, %v594_v6  ;;  %v656_v12 = vadd.s32 %v651_v10, %v612_v9 }
 0x117   : > { %v655_v36 = vadd.s32 %v650_v8, %v597_v11  ;;  %663 = vst.msk [vmem:[%s1163_s24 + $0x20] sm:$0x3] %vm662_vm10, %v656_v12 }
 0x119   : > { %661 = vst.msk [vmem:[%s1163_s24 + $0x18] sm:$0xff] %vm657_vm0, %v655_v36 }
 0x11a PF: > { %s12_s11 = sadd.s32 1, %s807_s11   ;;  %s1331_s9 = smov %s803_s10 }
 0x11b   : > { %p9_p5 = scmp.ge.s32.totalorder %s12_s11, 4   ;;  %s1332_s10 = smov %s1334_s12 }
 0x11d   :  { %11 = sbr.rel (!%p9_p5) target bundleno = 2 (0x2), region = 65 }

</bundles_post_ra>
